<compile_context>
chip_gen: v6e
topology: v6e:2x2x1
jax: 0.10.0
libtpu: 0.0.40
codegen_flags: <defaults>
</compile_context>

<pallas_src>
import functools

import jax
import jax.numpy as jnp
from jax.experimental import pallas as pl
from jax.experimental.pallas import tpu as pltpu


def _round_up(x, m):
    return ((x + m - 1) // m) * m


def graphnn_kernel(h_ref, m_ref, w_ref, out_ns_ref, out_ge_ref,
                   *, graph_hops, hidden, batch, nodes, offsets):
    H = hidden
    BN = batch * nodes
    o_gf, o_zrh, o_i, o_th, o_max, o_b = offsets

    # Static slices of the packed weight slab (loaded once, hop-invariant).
    w_gf = w_ref[o_gf:o_gf + 3 * H, 0:H]        # (3H, H)  gated-fusion weight
    wzr_h = w_ref[o_zrh:o_zrh + H, 0:2 * H]     # (H, 2H)  GRU z|r, h rows
    w_i = w_ref[o_i:o_i + H, 0:3 * H]           # (H, 3H)  GRU z|r|t, input rows
    wt_h = w_ref[o_th:o_th + H, 0:H]            # (H, H)   GRU t, (r*h) rows
    wmax = w_ref[o_max:o_max + H, 0:H]          # (H, H)   graph_maxpool proj
    fcz_b = w_ref[o_b:o_b + 1, 0:H]             # (1, H)   gated-fusion bias

    h = h_ref[...]                              # (BN, H) flat node state
    M = m_ref[...]                              # (2BN, BN): rows 0:BN -> bw, BN:2BN -> fw

    def mm(a, b):
        return jnp.dot(a, b, preferred_element_type=jnp.float32)

    # graph_hops is a static Python int -> fully unrolled at trace time.
    for _ in range(graph_hops):
        # ---- message passing (both directions, norms & +h folded in): 1 matmul
        msg = mm(M, h)                                  # (2BN, H)
        bw = msg[0:BN, :]
        fw = msg[BN:2 * BN, :]

        # ---- gated fusion: agg = GatedFusion(fw, bw): 1 matmul
        lhs3 = jnp.concatenate([fw, bw, fw * bw], axis=-1)   # (BN, 3H)
        z = jax.nn.sigmoid(mm(lhs3, w_gf) + fcz_b)
        agg = (1.0 - z) * fw + z * bw                         # (BN, H)

        # ---- GRU step: h = GRUStep(h, agg): 3 matmuls
        pre_i = mm(agg, w_i)                                  # (BN, 3H)
        zr = jax.nn.sigmoid(mm(h, wzr_h) + pre_i[:, 0:2 * H])
        z_g = zr[:, 0:H]
        r_g = zr[:, H:2 * H]
        t_g = jnp.tanh(mm(r_g * h, wt_h) + pre_i[:, 2 * H:3 * H])
        h = (1.0 - z_g) * h + z_g * t_g

    out_ns_ref[...] = h

    # graph_maxpool: max over the node axis of linear_max(node_state)
    proj = mm(h, wmax)                                        # (BN, H)
    parts = [jnp.max(proj[b * nodes:(b + 1) * nodes, :], axis=0, keepdims=True)
             for b in range(batch)]
    out_ge_ref[...] = jnp.concatenate(parts, axis=0)          # (B, H)


def graphnn_forward(node_state, node2edge, edge2node, params, graph_hops=2):
    B, N, H = node_state.shape

    n2e = node2edge.astype(jnp.float32)                 # (B, E, N)
    e2n = edge2node.astype(jnp.float32)                 # (B, N, E)
    n2e_t = jnp.transpose(n2e, (0, 2, 1))               # (B, N, E)
    e2n_t = jnp.transpose(e2n, (0, 2, 1))               # (B, E, N)

    eye = jnp.eye(N, dtype=jnp.float32)
    inv_bw = 1.0 / (jnp.sum(e2n, axis=2, keepdims=True) + 1.0)    # (B, N, 1)
    inv_fw = 1.0 / (jnp.sum(n2e_t, axis=2, keepdims=True) + 1.0)  # (B, N, 1)

    # Hop-invariant per-batch (N, N) message operators with norms and identity folded in:
    #   bw = inv_bw * (e2n @ n2e @ h + h),   fw = inv_fw * (n2e^T @ e2n^T @ h + h)
    M_bw = inv_bw * (jnp.matmul(e2n, n2e) + eye)         # (B, N, N)
    M_fw = inv_fw * (jnp.matmul(n2e_t, e2n_t) + eye)     # (B, N, N)

    # Block-diagonal over the batch so the kernel works on flat h (B*N, H).
    eyeB = jnp.eye(B, dtype=jnp.float32)
    bd_bw = jnp.einsum('bij,bc->bicj', M_bw, eyeB).reshape(B * N, B * N)
    bd_fw = jnp.einsum('bij,bc->bicj', M_fw, eyeB).reshape(B * N, B * N)
    M_msg = jnp.concatenate([bd_bw, bd_fw], axis=0)      # (2BN, BN)

    # --- weight prep (all trace-time, one-time XLA work) ---
    # fc_z acted on cat([fw, bw, fw*bw, fw-bw]); fold the (fw-bw) block:
    #   cat(...) @ W  ==  fw@(W1+W4) + bw@(W2-W4) + (fw*bw)@W3
    fcz_w = params["fcz_w"]                              # (4H, H)
    W1, W2, W3, W4 = (fcz_w[0:H], fcz_w[H:2 * H],
                      fcz_w[2 * H:3 * H], fcz_w[3 * H:4 * H])
    w_gf = jnp.concatenate([W1 + W4, W2 - W4, W3], axis=0)        # (3H, H)

    wz, wr, wt = params["wz"], params["wr"], params["wt"]         # (2H, H) each
    wzr_h = jnp.concatenate([wz[0:H], wr[0:H]], axis=1)           # (H, 2H)
    w_i = jnp.concatenate([wz[H:2 * H], wr[H:2 * H], wt[H:2 * H]], axis=1)  # (H, 3H)
    wt_h = wt[0:H]                                                # (H, H)
    wmax = params["wmax"]                                         # (H, H)
    fcz_b = params["fcz_b"]                                       # (1, H)

    # Pack everything into one tile-aligned VMEM slab (lane width = one vreg row).
    LW = _round_up(3 * H, 128)
    blocks = [w_gf, wzr_h, w_i, wt_h, wmax, fcz_b]
    offsets = []
    padded = []
    cur = 0
    for blk in blocks:
        offsets.append(cur)
        r, c = blk.shape
        rp = _round_up(r, 8)
        padded.append(jnp.pad(blk, ((0, rp - r), (0, LW - c))))
        cur += rp
    slab = jnp.concatenate(padded, axis=0)                        # (cur, LW)

    h_flat = node_state.astype(jnp.float32).reshape(B * N, H)

    kernel = functools.partial(graphnn_kernel, graph_hops=graph_hops,
                               hidden=H, batch=B, nodes=N,
                               offsets=tuple(offsets))

    def vmem():
        return pl.BlockSpec(memory_space=pltpu.MemorySpace.VMEM)

    # Single invocation (no grid): the whole problem is a few hundred KB, so all
    # operands sit in VMEM at once and every weight is DMA'd exactly once.
    out_ns, out_ge = pl.pallas_call(
        kernel,
        out_shape=(jax.ShapeDtypeStruct((B * N, H), jnp.float32),
                   jax.ShapeDtypeStruct((B, H), jnp.float32)),
        in_specs=[vmem(), vmem(), vmem()],
        out_specs=(vmem(), vmem()),
        input_output_aliases={0: 0},   # final node_state written in place
    )(h_flat, M_msg, slab)

    # PyTorch returns node_state.transpose(0, 1) and graph_embedding.unsqueeze(0)
    node_state_out = jnp.transpose(out_ns.reshape(B, N, H), (1, 0, 2))  # (N, B, H)
    graph_embedding = out_ge[None, :, :]                                 # (1, B, H)
    return node_state_out, graph_embedding


def reference_forward(node_state, node2edge, edge2node, params, graph_hops=2):
    """Plain-JAX reference mirroring the PyTorch static path."""
    def msg_pass(h, a_n2e, a_e2n):
        emb = jnp.matmul(a_n2e, h)
        norm = jnp.sum(a_e2n, axis=2, keepdims=True) + 1.0
        return (jnp.matmul(a_e2n, emb) + h) / norm

    def gated_fusion(h, inp):
        cat = jnp.concatenate([h, inp, h * inp, h - inp], axis=-1)
        z = jax.nn.sigmoid(jnp.matmul(cat, params["fcz_w"]) + params["fcz_b"])
        return (1.0 - z) * h + z * inp

    def gru_step(h, inp):
        cat = jnp.concatenate([h, inp], axis=-1)
        z = jax.nn.sigmoid(jnp.matmul(cat, params["wz"]))
        r = jax.nn.sigmoid(jnp.matmul(cat, params["wr"]))
        t = jnp.tanh(jnp.matmul(jnp.concatenate([r * h, inp], axis=-1), params["wt"]))
        return (1.0 - z) * h + z * t

    h = node_state
    n2e_t = jnp.transpose(node2edge, (0, 2, 1))
    e2n_t = jnp.transpose(edge2node, (0, 2, 1))
    for _ in range(graph_hops):
        bw = msg_pass(h, node2edge, edge2node)
        fw = msg_pass(h, e2n_t, n2e_t)
        agg = gated_fusion(fw, bw)
        h = gru_step(h, agg)
    proj = jnp.matmul(h, params["wmax"])                    # (B, N, H)
    ge = jnp.max(proj, axis=1)                              # (B, H)
    return jnp.transpose(h, (1, 0, 2)), ge[None, :, :]


if __name__ == "__main__":
    key = jax.random.PRNGKey(0)
    B, N, E, H = 2, 8, 12, 32
    graph_hops = 2
    ks = jax.random.split(key, 9)

    node_state = jax.random.normal(ks[0], (B, N, H), jnp.float32) * 0.5
    node2edge = (jax.random.uniform(ks[1], (B, E, N)) < 0.3).astype(jnp.float32)
    edge2node = (jax.random.uniform(ks[2], (B, N, E)) < 0.3).astype(jnp.float32)

    scale = 1.0 / jnp.sqrt(jnp.float32(H))
    params = {
        "wmax":  jax.random.normal(ks[3], (H, H), jnp.float32) * scale,
        "fcz_w": jax.random.normal(ks[4], (4 * H, H), jnp.float32) * scale,
        "fcz_b": jax.random.normal(ks[5], (1, H), jnp.float32) * 0.1,
        "wz":    jax.random.normal(ks[6], (2 * H, H), jnp.float32) * scale,
        "wr":    jax.random.normal(ks[7], (2 * H, H), jnp.float32) * scale,
        "wt":    jax.random.normal(ks[8], (2 * H, H), jnp.float32) * scale,
    }

    # Reference first (plain JAX, mirrors PyTorch static path).
    ns_ref, ge_ref = reference_forward(node_state, node2edge, edge2node, params,
                                       graph_hops=graph_hops)

    ns_out, ge_out = graphnn_forward(node_state, node2edge, edge2node, params,
                                     graph_hops=graph_hops)
    jax.block_until_ready((ns_out, ge_out))

    assert ns_out.shape == (N, B, H) and ge_out.shape == (1, B, H)
    assert jnp.allclose(ns_out, ns_ref, atol=1e-2, rtol=1e-2)
    assert jnp.allclose(ge_out, ge_ref, atol=1e-2, rtol=1e-2)

    print("KERNEL_OK")
</pallas_src>

<mosaic_0001>
module attributes {stable_mosaic.version = 11 : i64} {
  func.func @graphnn_kernel(%arg0: memref<16x32xf32, #tpu.memory_space<vmem>>, %arg1: memref<32x16xf32, #tpu.memory_space<vmem>>, %arg2: memref<232x128xf32, #tpu.memory_space<vmem>>, %arg3: memref<16x32xf32, #tpu.memory_space<vmem>>, %arg4: memref<2x32xf32, #tpu.memory_space<vmem>>) attributes {dimension_semantics = [], scalar_prefetch = 0 : i64, scratch_operands = 0 : i64, tpu.core_type = #tpu.core_type<tc>} {
    %c0 = arith.constant 0 : index
    %c0_0 = arith.constant 0 : index
    %0 = vector.load %arg2[%c0, %c0_0] : memref<232x128xf32, #tpu.memory_space<vmem>>, vector<96x32xf32>
    %c96 = arith.constant 96 : index
    %c0_1 = arith.constant 0 : index
    %1 = vector.load %arg2[%c96, %c0_1] : memref<232x128xf32, #tpu.memory_space<vmem>>, vector<32x64xf32>
    %c128 = arith.constant 128 : index
    %c0_2 = arith.constant 0 : index
    %2 = vector.load %arg2[%c128, %c0_2] : memref<232x128xf32, #tpu.memory_space<vmem>>, vector<32x96xf32>
    %c160 = arith.constant 160 : index
    %c0_3 = arith.constant 0 : index
    %3 = vector.load %arg2[%c160, %c0_3] : memref<232x128xf32, #tpu.memory_space<vmem>>, vector<32x32xf32>
    %c192 = arith.constant 192 : index
    %c0_4 = arith.constant 0 : index
    %4 = vector.load %arg2[%c192, %c0_4] : memref<232x128xf32, #tpu.memory_space<vmem>>, vector<32x32xf32>
    %c224 = arith.constant 224 : index
    %c0_5 = arith.constant 0 : index
    %5 = vector.load %arg2[%c224, %c0_5] : memref<232x128xf32, #tpu.memory_space<vmem>>, vector<1x32xf32>
    %c0_6 = arith.constant 0 : index
    %c0_7 = arith.constant 0 : index
    %6 = vector.load %arg0[%c0_6, %c0_7] : memref<16x32xf32, #tpu.memory_space<vmem>>, vector<16x32xf32>
    %c0_8 = arith.constant 0 : index
    %c0_9 = arith.constant 0 : index
    %7 = vector.load %arg1[%c0_8, %c0_9] : memref<32x16xf32, #tpu.memory_space<vmem>>, vector<32x16xf32>
    %cst = arith.constant dense<0.000000e+00> : vector<32x32xf32>
    %8 = tpu.matmul %7, %6, %cst {dimension_numbers = #tpu.dot_dimension_numbers<[1], [0], [0], [1], [0, 0, 1, 1], [], []>} : vector<32x16xf32>, vector<16x32xf32>, vector<32x32xf32> -> vector<32x32xf32>
    %9 = vector.extract_strided_slice %8 {offsets = [0, 0], sizes = [16, 32], strides = [1, 1]} : vector<32x32xf32> to vector<16x32xf32>
    %10 = vector.extract_strided_slice %8 {offsets = [16, 0], sizes = [16, 32], strides = [1, 1]} : vector<32x32xf32> to vector<16x32xf32>
    %11 = arith.mulf %10, %9 : vector<16x32xf32>
    %12 = tpu.concatenate %10, %9, %11 in 1 : vector<16x32xf32>, vector<16x32xf32>, vector<16x32xf32> -> vector<16x96xf32>
    %cst_10 = arith.constant dense<0.000000e+00> : vector<16x32xf32>
    %13 = tpu.matmul %12, %0, %cst_10 {dimension_numbers = #tpu.dot_dimension_numbers<[1], [0], [0], [1], [0, 0, 1, 1], [], []>} : vector<16x96xf32>, vector<96x32xf32>, vector<16x32xf32> -> vector<16x32xf32>
    %14 = vector.broadcast %5 : vector<1x32xf32> to vector<16x32xf32>
    %15 = arith.addf %13, %14 : vector<16x32xf32>
    %16 = arith.negf %15 : vector<16x32xf32>
    %17 = math.exp %16 : vector<16x32xf32>
    %cst_11 = arith.constant 1.000000e+00 : f32
    %18 = vector.broadcast %cst_11 : f32 to vector<16x32xf32>
    %19 = arith.addf %18, %17 : vector<16x32xf32>
    %20 = arith.divf %18, %19 : vector<16x32xf32>
    %cst_12 = arith.constant 1.000000e+00 : f32
    %21 = vector.broadcast %cst_12 : f32 to vector<16x32xf32>
    %22 = arith.subf %21, %20 : vector<16x32xf32>
    %23 = arith.mulf %22, %10 : vector<16x32xf32>
    %24 = arith.mulf %20, %9 : vector<16x32xf32>
    %25 = arith.addf %23, %24 : vector<16x32xf32>
    %cst_13 = arith.constant dense<0.000000e+00> : vector<16x96xf32>
    %26 = tpu.matmul %25, %2, %cst_13 {dimension_numbers = #tpu.dot_dimension_numbers<[1], [0], [0], [1], [0, 0, 1, 1], [], []>} : vector<16x32xf32>, vector<32x96xf32>, vector<16x96xf32> -> vector<16x96xf32>
    %cst_14 = arith.constant dense<0.000000e+00> : vector<16x64xf32>
    %27 = tpu.matmul %6, %1, %cst_14 {dimension_numbers = #tpu.dot_dimension_numbers<[1], [0], [0], [1], [0, 0, 1, 1], [], []>} : vector<16x32xf32>, vector<32x64xf32>, vector<16x64xf32> -> vector<16x64xf32>
    %28 = vector.extract_strided_slice %26 {offsets = [0, 0], sizes = [16, 64], strides = [1, 1]} : vector<16x96xf32> to vector<16x64xf32>
    %29 = arith.addf %27, %28 : vector<16x64xf32>
    %30 = arith.negf %29 : vector<16x64xf32>
    %31 = math.exp %30 : vector<16x64xf32>
    %cst_15 = arith.constant 1.000000e+00 : f32
    %32 = vector.broadcast %cst_15 : f32 to vector<16x64xf32>
    %33 = arith.addf %32, %31 : vector<16x64xf32>
    %34 = arith.divf %32, %33 : vector<16x64xf32>
    %35 = vector.extract_strided_slice %34 {offsets = [0, 0], sizes = [16, 32], strides = [1, 1]} : vector<16x64xf32> to vector<16x32xf32>
    %36 = vector.extract_strided_slice %34 {offsets = [0, 32], sizes = [16, 32], strides = [1, 1]} : vector<16x64xf32> to vector<16x32xf32>
    %37 = arith.mulf %36, %6 : vector<16x32xf32>
    %cst_16 = arith.constant dense<0.000000e+00> : vector<16x32xf32>
    %38 = tpu.matmul %37, %3, %cst_16 {dimension_numbers = #tpu.dot_dimension_numbers<[1], [0], [0], [1], [0, 0, 1, 1], [], []>} : vector<16x32xf32>, vector<32x32xf32>, vector<16x32xf32> -> vector<16x32xf32>
    %39 = vector.extract_strided_slice %26 {offsets = [0, 64], sizes = [16, 32], strides = [1, 1]} : vector<16x96xf32> to vector<16x32xf32>
    %40 = arith.addf %38, %39 : vector<16x32xf32>
    %41 = math.tanh %40 : vector<16x32xf32>
    %cst_17 = arith.constant 1.000000e+00 : f32
    %42 = vector.broadcast %cst_17 : f32 to vector<16x32xf32>
    %43 = arith.subf %42, %35 : vector<16x32xf32>
    %44 = arith.mulf %43, %6 : vector<16x32xf32>
    %45 = arith.mulf %35, %41 : vector<16x32xf32>
    %46 = arith.addf %44, %45 : vector<16x32xf32>
    %cst_18 = arith.constant dense<0.000000e+00> : vector<32x32xf32>
    %47 = tpu.matmul %7, %46, %cst_18 {dimension_numbers = #tpu.dot_dimension_numbers<[1], [0], [0], [1], [0, 0, 1, 1], [], []>} : vector<32x16xf32>, vector<16x32xf32>, vector<32x32xf32> -> vector<32x32xf32>
    %48 = vector.extract_strided_slice %47 {offsets = [0, 0], sizes = [16, 32], strides = [1, 1]} : vector<32x32xf32> to vector<16x32xf32>
    %49 = vector.extract_strided_slice %47 {offsets = [16, 0], sizes = [16, 32], strides = [1, 1]} : vector<32x32xf32> to vector<16x32xf32>
    %50 = arith.mulf %49, %48 : vector<16x32xf32>
    %51 = tpu.concatenate %49, %48, %50 in 1 : vector<16x32xf32>, vector<16x32xf32>, vector<16x32xf32> -> vector<16x96xf32>
    %cst_19 = arith.constant dense<0.000000e+00> : vector<16x32xf32>
    %52 = tpu.matmul %51, %0, %cst_19 {dimension_numbers = #tpu.dot_dimension_numbers<[1], [0], [0], [1], [0, 0, 1, 1], [], []>} : vector<16x96xf32>, vector<96x32xf32>, vector<16x32xf32> -> vector<16x32xf32>
    %53 = vector.broadcast %5 : vector<1x32xf32> to vector<16x32xf32>
    %54 = arith.addf %52, %53 : vector<16x32xf32>
    %55 = arith.negf %54 : vector<16x32xf32>
    %56 = math.exp %55 : vector<16x32xf32>
    %cst_20 = arith.constant 1.000000e+00 : f32
    %57 = vector.broadcast %cst_20 : f32 to vector<16x32xf32>
    %58 = arith.addf %57, %56 : vector<16x32xf32>
    %59 = arith.divf %57, %58 : vector<16x32xf32>
    %cst_21 = arith.constant 1.000000e+00 : f32
    %60 = vector.broadcast %cst_21 : f32 to vector<16x32xf32>
    %61 = arith.subf %60, %59 : vector<16x32xf32>
    %62 = arith.mulf %61, %49 : vector<16x32xf32>
    %63 = arith.mulf %59, %48 : vector<16x32xf32>
    %64 = arith.addf %62, %63 : vector<16x32xf32>
    %cst_22 = arith.constant dense<0.000000e+00> : vector<16x96xf32>
    %65 = tpu.matmul %64, %2, %cst_22 {dimension_numbers = #tpu.dot_dimension_numbers<[1], [0], [0], [1], [0, 0, 1, 1], [], []>} : vector<16x32xf32>, vector<32x96xf32>, vector<16x96xf32> -> vector<16x96xf32>
    %cst_23 = arith.constant dense<0.000000e+00> : vector<16x64xf32>
    %66 = tpu.matmul %46, %1, %cst_23 {dimension_numbers = #tpu.dot_dimension_numbers<[1], [0], [0], [1], [0, 0, 1, 1], [], []>} : vector<16x32xf32>, vector<32x64xf32>, vector<16x64xf32> -> vector<16x64xf32>
    %67 = vector.extract_strided_slice %65 {offsets = [0, 0], sizes = [16, 64], strides = [1, 1]} : vector<16x96xf32> to vector<16x64xf32>
    %68 = arith.addf %66, %67 : vector<16x64xf32>
    %69 = arith.negf %68 : vector<16x64xf32>
    %70 = math.exp %69 : vector<16x64xf32>
    %cst_24 = arith.constant 1.000000e+00 : f32
    %71 = vector.broadcast %cst_24 : f32 to vector<16x64xf32>
    %72 = arith.addf %71, %70 : vector<16x64xf32>
    %73 = arith.divf %71, %72 : vector<16x64xf32>
    %74 = vector.extract_strided_slice %73 {offsets = [0, 0], sizes = [16, 32], strides = [1, 1]} : vector<16x64xf32> to vector<16x32xf32>
    %75 = vector.extract_strided_slice %73 {offsets = [0, 32], sizes = [16, 32], strides = [1, 1]} : vector<16x64xf32> to vector<16x32xf32>
    %76 = arith.mulf %75, %46 : vector<16x32xf32>
    %cst_25 = arith.constant dense<0.000000e+00> : vector<16x32xf32>
    %77 = tpu.matmul %76, %3, %cst_25 {dimension_numbers = #tpu.dot_dimension_numbers<[1], [0], [0], [1], [0, 0, 1, 1], [], []>} : vector<16x32xf32>, vector<32x32xf32>, vector<16x32xf32> -> vector<16x32xf32>
    %78 = vector.extract_strided_slice %65 {offsets = [0, 64], sizes = [16, 32], strides = [1, 1]} : vector<16x96xf32> to vector<16x32xf32>
    %79 = arith.addf %77, %78 : vector<16x32xf32>
    %80 = math.tanh %79 : vector<16x32xf32>
    %cst_26 = arith.constant 1.000000e+00 : f32
    %81 = vector.broadcast %cst_26 : f32 to vector<16x32xf32>
    %82 = arith.subf %81, %74 : vector<16x32xf32>
    %83 = arith.mulf %82, %46 : vector<16x32xf32>
    %84 = arith.mulf %74, %80 : vector<16x32xf32>
    %85 = arith.addf %83, %84 : vector<16x32xf32>
    %c0_27 = arith.constant 0 : index
    %c0_28 = arith.constant 0 : index
    %86 = vector.load %arg3[%c0_27, %c0_28] : memref<16x32xf32, #tpu.memory_space<vmem>>, vector<16x32xf32>
    tpu.vector_store %arg3[%c0_27, %c0_28], %85 {strides = array<i32>} : memref<16x32xf32, #tpu.memory_space<vmem>>, vector<16x32xf32>,
    %cst_29 = arith.constant dense<0.000000e+00> : vector<16x32xf32>
    %87 = tpu.matmul %85, %4, %cst_29 {dimension_numbers = #tpu.dot_dimension_numbers<[1], [0], [0], [1], [0, 0, 1, 1], [], []>} : vector<16x32xf32>, vector<32x32xf32>, vector<16x32xf32> -> vector<16x32xf32>
    %88 = vector.extract_strided_slice %87 {offsets = [0, 0], sizes = [8, 32], strides = [1, 1]} : vector<16x32xf32> to vector<8x32xf32>
    %cst_30 = arith.constant dense<0xFF800000> : vector<32xf32>
    %89 = vector.multi_reduction <maximumf>, %88, %cst_30 [0] : vector<8x32xf32> to vector<32xf32>
    %90 = vector.shape_cast %89 : vector<32xf32> to vector<1x32xf32>
    %91 = vector.extract_strided_slice %87 {offsets = [8, 0], sizes = [8, 32], strides = [1, 1]} : vector<16x32xf32> to vector<8x32xf32>
    %cst_31 = arith.constant dense<0xFF800000> : vector<32xf32>
    %92 = vector.multi_reduction <maximumf>, %91, %cst_31 [0] : vector<8x32xf32> to vector<32xf32>
    %93 = vector.shape_cast %92 : vector<32xf32> to vector<1x32xf32>
    %94 = tpu.concatenate %90, %93 in 0 : vector<1x32xf32>, vector<1x32xf32> -> vector<2x32xf32>
    %c0_32 = arith.constant 0 : index
    %c0_33 = arith.constant 0 : index
    %95 = vector.load %arg4[%c0_32, %c0_33] : memref<2x32xf32, #tpu.memory_space<vmem>>, vector<2x32xf32>
    tpu.vector_store %arg4[%c0_32, %c0_33], %94 {strides = array<i32>} : memref<2x32xf32, #tpu.memory_space<vmem>>, vector<2x32xf32>,
    return
  }
}

</mosaic_0001>

<bundles_post_ra>
// kernel: tpu_custom_call.1
= control target key start
LH: loop header
LB: loop body
LE: loop exit
PB: predicated region body
PF: predicated region fallthrough
CT: control target
= control target key end

     0   :  { %10 = vsyncpa [#allocation3], 0  ;;  %s1949_s0 = inlined_call_operand.hbm [shape: f32[16,32], index: 0, kind: input, shape index: {}, may-alias: {0,3}]   ;;  %s1950_s1 = inlined_call_operand.vmem [shape: f32[32,16], index: 1, kind: input, shape index: {}]   ;;  %s1951_s2 = inlined_call_operand.hbm [shape: f32[232,128], index: 2, kind: input, shape index: {}]   ;;  %s1952_s3 = inlined_call_operand.hbm [shape: f32[16,32], index: 3, kind: output, shape index: {0}, may-alias: {0,3}]   ;;  %s1953_s4 = inlined_call_operand.hbm [shape: f32[2,32], index: 4, kind: output, shape index: {1}]  }
   0x1   :  { %11 = vsyncpa [#allocation6], 0 }
   0x2   :  { %12 = vsyncpa [#allocation4], 0 }
   0x3   :  { %13 = vsyncpa [#allocation9], 0  ;;  %s1625_s15 = smov [#allocation2]  }
   0x4   :  { %s19_s16 = sshll.u32 %s1625_s15, 4  ;;  %s20_s16 = int_to_ptr.vmem [resolvable:$true] %s19_s16 }
   0x5   :  { %s1545_s17 = scalar_lea.vmem %s20_s16, 256  ;;  %p1550_p1 = scmp.lt.s32.totalorder %s20_s16, %s20_s16 }
   0x6   :  { %p1546_p0 = scmp.ne.s32.totalorder %s20_s16, %s1545_s17  ;;  %p1551_p2 = scmp.lt.s32.totalorder %s1545_s17, %s1545_s17 }
   0x8   :  { %p1552_p3 = por %p1551_p2, %p1550_p1 }
   0xa   :  { %p1553_p4 = pnand %p1552_p3, %p1546_p0 }
   0xc   :  { %1556 = shalt.err (!%p1553_p4)
}
   0xd   :  { %s1626_s18 = smov 128   ;;  %s1627_s19 = smov 8  }
   0xe   :  { %25 = dma.hbm_to_vmem [thread:$0]  %s1949_s0, 256, %s20_s16, [#allocation3], %s1626_s18, %s1626_s18, %s1627_s19  }
   0xf   :  { %s1628_s22 = smov [#allocation5]  }
  0x10   :  { %s33_s23 = sshll.u32 %s1628_s22, 4  ;;  %s34_s23 = int_to_ptr.vmem [resolvable:$true] %s33_s23 }
  0x11   :  { %s1565_s24 = scalar_lea.vmem %s34_s23, 3712  ;;  %p1570_p6 = scmp.lt.s32.totalorder %s34_s23, %s34_s23 }
  0x12   :  { %p1566_p5 = scmp.ne.s32.totalorder %s34_s23, %s1565_s24  ;;  %p1571_p7 = scmp.lt.s32.totalorder %s1565_s24, %s1565_s24 }
  0x14   :  { %p1572_p8 = por %p1571_p7, %p1570_p6 }
  0x16   :  { %p1573_p9 = pnand %p1572_p8, %p1566_p5 }
  0x18   :  { %1576 = shalt.err (!%p1573_p9)
}
  0x19   :  { %39 = dma.hbm_to_vmem [thread:$0]  %s1951_s2, 3712, %s34_s23, [#allocation6], %s1626_s18, %s1626_s18, %s1627_s19  }
  0x1a   :  { %1617 = dma.done.wait [#allocation3], 256  }
  0x1b   :  { %1618 = vsyncadd [#allocation3], 4294967040 }
  0x1c   :  { %1619 = dma.done.wait [#allocation6], 3712  }
  0x1d   :  { %1620 = vsyncadd [#allocation6], 4294963584  ;;  %vm81_vm0 = vcmask 130048   ;;  %v1671_v0 = vld [vmem:[#allocation2 + $0x8] sm:$0xff]  ;;  %v1673_v1 = vld [vmem:[#allocation2] sm:$0xff]  ;;  %s1630_s7 = smov 64  }
  0x1e   :  { %v1678_v2 = vld [vmem:[%s1950_s1] sm:$0xff]  ;;  %1337 = vmatprep.subr.mxu1 %v1671_v0  ;;  %v1687_v3 = vld [vmem:[%s1950_s1 + $0x8] sm:$0xff]  ;;  %v1693_v4 = vld [vmem:[%s1950_s1 + $0x10] sm:$0xff]  ;;  %vm197_vm1 = vcmask 261120   ;;  %vm200_vm2 = vcmask 523264   ;;  %vm207_vm3 = vcmask 785408  }
  0x1f   :  { %1341 = vmatprep.mubr.msk.f32.mxu1 %vm81_vm0, %v1678_v2  ;;  %1338 = vmatpush3.msra.mxu1 %v1671_v0  ;;  %v1703_v5 = vld [vmem:[%s1950_s1 + $0x18] sm:$0xff]  ;;  %v1707_v6 = vld [vmem:[#allocation5 + $0x58] sm:$0xff]  ;;  %v1709_v7 = vld [vmem:[#allocation5 + $0x50] sm:$0xff]  ;;  %s1629_s1 = smov 32   ;;  %s1631_s8 = smov 96  }
  0x20   :  { %1339 = vmatprep.subr.mxu1 %v1673_v1  ;;  %v1713_v8 = vld [vmem:[#allocation5 + $0x48] sm:$0xff]  ;;  %v1717_v9 = vld [vmem:[#allocation5 + $0x40] sm:$0xff]  ;;  %v1721_v10 = vld [vmem:[#allocation5 + $0x38] sm:$0xff]  ;;  %s1632_s9 = smov [#allocation7]  }
  0x21   :  { %1340 = vmatpush3.msra.mxu1 %v1673_v1  ;;  %v1725_v11 = vld [vmem:[#allocation5 + $0x30] sm:$0xff]  ;;  %v1731_v12 = vld [vmem:[#allocation5 + $0x28] sm:$0xff]  ;;  %v1735_v13 = vld [vmem:[#allocation5 + $0x20] sm:$0xff]  ;;  %s1193_s10 = sshll.u32 %s1632_s9, 4  ;;  %s1194_s10 = int_to_ptr.vmem [resolvable:$true] %s1193_s10 }
  0x22   :  { %1342 = vmatmul.mubr.msk.f32.vlgmr.msra.gmra.mxu1 %vm81_vm0, %v1687_v3  ;;  %1347 = vmatprep.subr.mxu1 %v1707_v6  ;;  %v1739_v14 = vld [vmem:[#allocation5 + $0x18] sm:$0xff]  ;;  %v1743_v15 = vld [vmem:[#allocation5 + $0x10] sm:$0xff]  ;;  %v1747_v16 = vld [vmem:[#allocation5 + $0x8] sm:$0xff]  ;;  %s1577_s11 = scalar_lea.vmem %s1194_s10, 256  ;;  %p1582_p11 = scmp.lt.s32.totalorder %s1194_s10, %s1194_s10 }
  0x23   :  { %1344 = vmatprep.mubr.msk.f32.mxu1 %vm81_vm0, %v1693_v4  ;;  %1348 = vmatpush3.msra.mxu1 %v1707_v6  ;;  %v1751_v17 = vld [vmem:[#allocation5] sm:$0xff]  ;;  %v1775_v32 = vld [vmem:[#allocation5 + $0x98] sm:$0xff]  ;;  %v1777_v33 = vld [vmem:[#allocation5 + $0x90] sm:$0xff]  ;;  %p1578_p10 = scmp.ne.s32.totalorder %s1194_s10, %s1577_s11  ;;  %p1583_p12 = scmp.lt.s32.totalorder %s1577_s11, %s1577_s11 }
  0x24   :  { %1349 = vmatprep.subr.mxu1 %v1709_v7  ;;  %1374 = vmatprep.subr.mxu0 %v1775_v32  ;;  %v1781_v34 = vld [vmem:[#allocation5 + $0x88] sm:$0xff]  ;;  %v1785_v35 = vld [vmem:[#allocation5 + $0x80] sm:$0xff]  ;;  %v1791_v36 = vld [vmem:[#allocation5 + $0x78] sm:$0xff] }
  0x25   :  { %1350 = vmatpush3.msra.mxu1 %v1709_v7  ;;  %1375 = vmatpush3.msra.mxu0 %v1775_v32  ;;  %v1794_v37 = vld [vmem:[#allocation5 + $0xe0] ss:$0 sm:$0xff]  ;;  %v1800_v58 = vld [vmem:[#allocation5 + $0x70] sm:$0xff]  ;;  %v1804_v59 = vld [vmem:[#allocation5 + $0x68] sm:$0xff]  ;;  %p1584_p13 = por %p1583_p12, %p1582_p11 }
  0x26   :  { %1345 = vmatmul.mubr.msk.f32.gmra.mxu1 %vm81_vm0, %v1703_v5  ;;  %1351 = vmatprep.subr.mxu1 %v1713_v8  ;;  %v1810_v60 = vld [vmem:[#allocation5 + $0x60] sm:$0xff]  ;;  %v1818_v61 = vld [vmem:[#allocation5 + $0xb8] sm:$0xff]  ;;  %v1820_v62 = vld [vmem:[#allocation5 + $0xb0] sm:$0xff] }
  0x27   :  { %1352 = vmatpush3.msra.mxu1 %v1713_v8  ;;  %1376 = vmatprep.subr.mxu0 %v1777_v33  ;;  %v1824_v63 = vld [vmem:[#allocation5 + $0xa8] sm:$0xff]  ;;  %p1585_p0 = pnand %p1584_p13, %p1578_p10 }
  0x28   :  { %1353 = vmatprep.subr.mxu1 %v1717_v9  ;;  %1377 = vmatpush3.msra.mxu0 %v1777_v33 }
  0x29   :  { %1354 = vmatpush3.msra.mxu1 %v1717_v9  ;;  %1378 = vmatprep.subr.mxu0 %v1781_v34 }
  0x2a   :  { %1355 = vmatprep.subr.mxu1 %v1721_v10  ;;  %1379 = vmatpush3.msra.mxu0 %v1781_v34 }
  0x2b   :  { %1356 = vmatpush3.msra.mxu1 %v1721_v10  ;;  %1380 = vmatprep.subr.mxu0 %v1785_v35 }
  0x2c   :  { %1357 = vmatprep.subr.mxu1 %v1725_v11  ;;  %1381 = vmatpush3.msra.mxu0 %v1785_v35 }
  0x2d   :  { %1358 = vmatpush3.msra.mxu1 %v1725_v11  ;;  %1385 = vmatprep.subr.mxu0 %v1791_v36 }
  0x2e   :  { %1359 = vmatprep.subr.mxu1 %v1731_v12 }
  0x2f   :  { %1360 = vmatpush3.msra.mxu1 %v1731_v12 }
  0x30   :  { %1361 = vmatprep.subr.mxu1 %v1735_v13 }
  0x31   :  { %1362 = vmatpush3.msra.mxu1 %v1735_v13 }
  0x32   :  { %1363 = vmatprep.subr.mxu1 %v1739_v14 }
  0x33   :  { %1364 = vmatpush3.msra.mxu1 %v1739_v14 }
  0x34   :  { %1365 = vmatprep.subr.mxu1 %v1743_v15 }
  0x35   :  { %1366 = vmatpush3.msra.mxu1 %v1743_v15 }
  0x36   :  { %1367 = vmatprep.subr.mxu1 %v1747_v16 }
  0x37   :  { %1368 = vmatpush3.msra.mxu1 %v1747_v16 }
  0x38   :  { %1369 = vmatprep.subr.mxu1 %v1751_v17 }
  0x39   :  { %1370 = vmatpush3.msra.mxu1 %v1751_v17 }
  0xe2   :  { %v1754_v18 = vpop.f32.mrf.mxu1 }
  0xe4   :  { %v160_v19 = vpop.f32.mrf.mxu1 }
  0xe5   :  { %183 = vrot.lane.b32.xlu0 %v160_v19, %s1629_s1 }
  0xe6   :  { %v1346_v20 = vpop.f32.mrf.mxu1 }
  0xe7   :  { %v180_v23 = vmul.f32 %v1346_v20, %v1754_v18 }
  0xe8   :  { %v170_v21 = vpop.f32.mrf.mxu1 }
  0xe9   :  { %185 = vrot.lane.b32.xlu0 %v1754_v18, %s1629_s1  ;;  %v179_v22 = vmul.f32 %v170_v21, %v160_v19 }
  0xeb   :  { %191 = vrot.lane.b32.xlu1 %v179_v22, %s1630_s7 }
  0xed   :  { %483 = vrot.lane.b32.xlu0 %v1673_v1, %s1629_s1 }
  0xef   :  { %193 = vrot.lane.b32.xlu1 %v180_v23, %s1630_s7 }
  0xf3   :  { %485 = vrot.lane.b32.xlu1 %v1671_v0, %s1629_s1 }
 0x157   :  { %v184_v24 = vpop.permute.xlu0 %183 }
 0x158   :  { %v198_v25 = vsel %vm197_vm1, %v170_v21, %v184_v24 }
 0x15b   :  { %v186_v27 = vpop.permute.xlu0 %185 }
 0x15c   :  { %v199_v29 = vsel %vm197_vm1, %v1346_v20, %v186_v27 }
 0x15d   :  { %v192_v26 = vpop.permute.xlu1 %191 }
 0x15e   :  { %v201_v28 = vsel %vm200_vm2, %v198_v25, %v192_v26 }
 0x15f   :  { %1371 = vmatprep.mubr.msk.f32.mxu1 %vm207_vm3, %v201_v28 }
 0x161   :  { %v194_v30 = vpop.permute.xlu1 %193 }
 0x162   :  { %v202_v31 = vsel %vm200_vm2, %v199_v29, %v194_v30  ;;  %v1830_v29 = vld [vmem:[#allocation5 + $0xa0] sm:$0xff] }
 0x163   :  { %1372 = vmatmul.mubr.msk.f32.vlgmr.msra.gmra.mxu1 %vm207_vm3, %v202_v31 }
 0x164   :  { %1411 = vmatprep.mubr.msk.f32.mxu1 %vm81_vm0, %v1678_v2 }
 0x165   :  { %v486_v30 = vpop.permute.xlu1 %485 }
 0x223   :  { %v1373_v38 = vpop.f32.mrf.mxu1 }
 0x224   :  { %v286_v39 = vadd.f32 %v1373_v38, %v1794_v37  ;;  %v484_v38 = vpop.permute.xlu0 %483 }
 0x225   :  { %v280_v40 = vpop.f32.mrf.mxu1 }
 0x226   :  { %v1228_v41 = vmul.f32 -1.442695, %v286_v39  ;;  %v281_v42 = vadd.f32 %v1794_v37, %v280_v40 }
 0x228   :  { %1497 = vpow2.f32 %v1228_v41  ;;  %v1227_v43 = vmul.f32 -1.442695, %v281_v42 }
 0x22a   :  { %1499 = vpow2.f32 %v1227_v43 }
 0x235   :  { %v1498_v44 = vpop.eup %1497 }
 0x236   :  { %v296_v45 = vadd.f32 1.0, %v1498_v44 }
 0x237   :  { %v1500_v46 = vpop.eup %1499 }
 0x238   :  { %1501 = vrcp.f32 %v296_v45  ;;  %v295_v47 = vadd.f32 1.0, %v1500_v46 }
 0x23a   :  { %1503 = vrcp.f32 %v295_v47 }
 0x245   :  { %v1502_v48 = vpop.eup %1501 }
 0x246   :  { %v302_v49 = vsub.f32 1.0, %v1502_v48  ;;  %v306_v55 = vmul.f32 %v1502_v48, %v1754_v18 }
 0x247   :  { %v1504_v50 = vpop.eup %1503 }
 0x248   :  { %v301_v51 = vsub.f32 1.0, %v1504_v50  ;;  %v304_v52 = vmul.f32 %v1346_v20, %v302_v49  ;;  %v305_v54 = vmul.f32 %v1504_v50, %v160_v19 }
 0x24a   :  { %v303_v53 = vmul.f32 %v301_v51, %v170_v21  ;;  %v308_v57 = vadd.f32 %v306_v55, %v304_v52 }
 0x24c   :  { %v307_v56 = vadd.f32 %v305_v54, %v303_v53 }
 0x24e   :  { %1382 = vmatprep.mubr.msk.f32.mxu0 %vm197_vm1, %v307_v56 }
 0x24f   :  { %1383 = vmatmul.mubr.msk.f32.vlgmr.msra.gmra.mxu0 %vm197_vm1, %v308_v57 }
 0x250   :  { %1386 = vmatpush3.msra.mxu0 %v1791_v36  ;;  %1393 = vmatprep.mubr.msk.f32.mxu0 %vm197_vm1, %v1673_v1 }
 0x251   :  { %1387 = vmatprep.subr.mxu0 %v1800_v58 }
 0x252   :  { %1388 = vmatpush3.msra.mxu0 %v1800_v58 }
 0x253   :  { %1389 = vmatprep.subr.mxu0 %v1804_v59 }
 0x254   :  { %1390 = vmatpush3.msra.mxu0 %v1804_v59 }
 0x255   :  { %1391 = vmatprep.subr.mxu0 %v1810_v60 }
 0x256   :  { %1392 = vmatpush3.msra.mxu0 %v1810_v60 }
 0x257   :  { %1394 = vmatmul.mubr.msk.f32.vlgmr.msra.gmra.mxu0 %vm197_vm1, %v1671_v0  ;;  %1396 = vmatprep.subr.mxu0 %v1818_v61 }
 0x258   :  { %1397 = vmatpush3.msra.mxu0 %v1818_v61 }
 0x259   :  { %1398 = vmatprep.subr.mxu0 %v1820_v62 }
 0x25a   :  { %1399 = vmatpush3.msra.mxu0 %v1820_v62 }
 0x25b   :  { %1400 = vmatprep.subr.mxu0 %v1824_v63 }
 0x25c   :  { %1401 = vmatpush3.msra.mxu0 %v1824_v63 }
 0x25d   :  { %1402 = vmatprep.subr.mxu0 %v1830_v29 }
 0x25e   :  { %1403 = vmatpush3.msra.mxu0 %v1830_v29 }
 0x25f   :  { %1417 = vmatprep.subr.mxu0 %v1707_v6 }
 0x30f   :  { %v1384_v2 = vpop.f32.mrf.mxu0 }
 0x311   :  { %v381_v18 = vpop.f32.mrf.mxu0 }
 0x317   :  { %v1395_v19 = vpop.f32.mrf.mxu0 }
 0x318   :  { %v468_v20 = vadd.f32 %v1395_v19, %v1384_v2 }
 0x319   :  { %v462_v21 = vpop.f32.mrf.mxu0 }
 0x31a   :  { %v1234_v22 = vmul.f32 -1.442695, %v468_v20  ;;  %v463_v23 = vadd.f32 %v462_v21, %v381_v18 }
 0x31c   :  { %1505 = vpow2.f32 %v1234_v22  ;;  %v1233_v24 = vmul.f32 -1.442695, %v463_v23 }
 0x31e   :  { %1507 = vpow2.f32 %v1233_v24 }
 0x329   :  { %v1506_v25 = vpop.eup %1505 }
 0x32a   :  { %v478_v26 = vadd.f32 1.0, %v1506_v25 }
 0x32b   :  { %v1508_v27 = vpop.eup %1507 }
 0x32c   :  { %1509 = vrcp.f32 %v478_v26  ;;  %v477_v28 = vadd.f32 1.0, %v1508_v27 }
 0x32e   :  { %1511 = vrcp.f32 %v477_v28 }
 0x339   :  { %v1510_v31 = vpop.eup %1509 }
 0x33a   :  { %v490_v39 = vmul.f32 %v1510_v31, %v486_v30 }
 0x33b   :  { %v1512_v40 = vpop.eup %1511 }
 0x33c   :  { %v489_v41 = vmul.f32 %v1512_v40, %v484_v38  ;;  %495 = vrot.lane.b32.xlu1 %v490_v39, %s1631_s8 }
 0x33e   :  { %493 = vrot.lane.b32.xlu0 %v489_v41, %s1631_s8 }
 0x340   :  { %499 = vrot.lane.b32.xlu1 %v381_v18, %s1630_s7 }
 0x342   :  { %501 = vrot.lane.b32.xlu0 %v1384_v2, %s1630_s7 }
 0x3ae   :  { %v496_v43 = vpop.permute.xlu1 %495 }
 0x3b0   :  { %v494_v42 = vpop.permute.xlu0 %493 }
 0x3b1   :  { %1404 = vmatprep.mubr.msk.f32.mxu0 %vm197_vm1, %v494_v42 }
 0x3b2   :  { %1405 = vmatmul.mubr.msk.f32.vlgmr.msra.gmra.mxu0 %vm197_vm1, %v496_v43 }
 0x3b3   :  { %1418 = vmatpush3.msra.mxu0 %v1707_v6 }
 0x3b4   :  { %1419 = vmatprep.subr.mxu0 %v1709_v7  ;;  %v502_v6 = vpop.permute.xlu0 %501 }
 0x3b5   :  { %1420 = vmatpush3.msra.mxu0 %v1709_v7 }
 0x3b6   :  { %1421 = vmatprep.subr.mxu0 %v1713_v8 }
 0x3b7   :  { %1422 = vmatpush3.msra.mxu0 %v1713_v8 }
 0x3b8   :  { %1423 = vmatprep.subr.mxu0 %v1717_v9 }
 0x3b9   :  { %1424 = vmatpush3.msra.mxu0 %v1717_v9  ;;  %v500_v9 = vpop.permute.xlu1 %499 }
 0x3ba   :  { %1425 = vmatprep.subr.mxu0 %v1721_v10 }
 0x3bb   :  { %1426 = vmatpush3.msra.mxu0 %v1721_v10 }
 0x3bc   :  { %1427 = vmatprep.subr.mxu0 %v1725_v11 }
 0x3bd   :  { %1428 = vmatpush3.msra.mxu0 %v1725_v11 }
 0x3be   :  { %1429 = vmatprep.subr.mxu0 %v1731_v12 }
 0x3bf   :  { %1430 = vmatpush3.msra.mxu0 %v1731_v12  ;;  %v587_v12 = vsub.f32 1.0, %v1510_v31 }
 0x3c0   :  { %1431 = vmatprep.subr.mxu0 %v1735_v13 }
 0x3c1   :  { %1432 = vmatpush3.msra.mxu0 %v1735_v13  ;;  %v586_v13 = vsub.f32 1.0, %v1512_v40 }
 0x3c2   :  { %1433 = vmatprep.subr.mxu0 %v1739_v14 }
 0x3c3   :  { %1434 = vmatpush3.msra.mxu0 %v1739_v14  ;;  %v588_v46 = vmul.f32 %v586_v13, %v1673_v1  ;;  %v72_v13 = vld [vmem:[#allocation5 + $0xd0] sm:$0xff] }
 0x3c4   :  { %1435 = vmatprep.subr.mxu0 %v1743_v15 }
 0x3c5   :  { %1436 = vmatpush3.msra.mxu0 %v1743_v15  ;;  %v589_v15 = vmul.f32 %v587_v12, %v1671_v0  ;;  %v73_v12 = vld [vmem:[#allocation5 + $0xd8] sm:$0xff] }
 0x3c6   :  { %1437 = vmatprep.subr.mxu0 %v1747_v16 }
 0x3c7   :  { %1438 = vmatpush3.msra.mxu0 %v1747_v16 }
 0x3c8   :  { %1439 = vmatprep.subr.mxu0 %v1751_v17 }
 0x3c9   :  { %1440 = vmatpush3.msra.mxu0 %v1751_v17 }
 0x3ca   :  { %1477 = vmatprep.subr.mxu0 %v73_v12 }
 0x472   :  { %v1406_v7 = vpop.f32.mrf.mxu0 }
 0x473   :  { %v581_v8 = vadd.f32 %v1406_v7, %v502_v6 }
 0x474   :  { %v575_v10 = vpop.f32.mrf.mxu0 }
 0x475   :  { %1513 = vtanh.f32 %v581_v8  ;;  %v576_v11 = vadd.f32 %v575_v10, %v500_v9 }
 0x477   :  { %1515 = vtanh.f32 %v576_v11 }
 0x482   :  { %v1514_v14 = vpop.eup %1513 }
 0x483   :  { %v591_v44 = vmul.f32 %v1514_v14, %v1510_v31  ;;  %v71_v14 = vld [vmem:[#allocation5 + $0xc8] sm:$0xff] }
 0x484   :  { %v1516_v45 = vpop.eup %1515 }
 0x485   :  { %v1865_v16 = vadd.f32 %v591_v44, %v589_v15  ;;  %v590_v17 = vmul.f32 %v1516_v45, %v1512_v40  ;;  %v70_v15 = vld [vmem:[#allocation5 + $0xc0] sm:$0xff] }
 0x487   :  { %1407 = vmatprep.subr.mxu1 %v1865_v16  ;;  %v1869_v47 = vadd.f32 %v590_v17, %v588_v46 }
 0x488   :  { %1408 = vmatpush3.msra.mxu1 %v1865_v16 }
 0x489   :  { %1409 = vmatprep.subr.mxu1 %v1869_v47 }
 0x48a   :  { %1410 = vmatpush3.msra.mxu1 %v1869_v47 }
 0x48b   :  { %1412 = vmatmul.mubr.msk.f32.vlgmr.msra.gmra.mxu1 %vm81_vm0, %v1687_v3  ;;  %1444 = vmatprep.subr.mxu1 %v1775_v32 }
 0x48c   :  { %1414 = vmatprep.mubr.msk.f32.mxu1 %vm81_vm0, %v1693_v4  ;;  %1445 = vmatpush3.msra.mxu1 %v1775_v32 }
 0x48d   :  { %1446 = vmatprep.subr.mxu1 %v1777_v33 }
 0x48e   :  { %1447 = vmatpush3.msra.mxu1 %v1777_v33 }
 0x48f   :  { %1415 = vmatmul.mubr.msk.f32.gmra.mxu1 %vm81_vm0, %v1703_v5  ;;  %1448 = vmatprep.subr.mxu1 %v1781_v34 }
 0x490   :  { %1449 = vmatpush3.msra.mxu1 %v1781_v34 }
 0x491   :  { %1450 = vmatprep.subr.mxu1 %v1785_v35 }
 0x492   :  { %1451 = vmatpush3.msra.mxu1 %v1785_v35 }
 0x493   :  { %1455 = vmatprep.subr.mxu1 %v1791_v36 }
 0x54b   :  { %v1413_v0 = vpop.f32.mrf.mxu1 }
 0x54c   :  { %685 = vrot.lane.b32.xlu1 %v1413_v0, %s1629_s1 }
 0x54d   :  { %v660_v1 = vpop.f32.mrf.mxu1 }
 0x54e   :  { %683 = vrot.lane.b32.xlu0 %v660_v1, %s1629_s1 }
 0x54f   :  { %v1416_v3 = vpop.f32.mrf.mxu1 }
 0x550   :  { %v680_v4 = vmul.f32 %v1416_v3, %v1413_v0 }
 0x551   :  { %v670_v32 = vpop.f32.mrf.mxu1 }
 0x552   :  { %v679_v5 = vmul.f32 %v670_v32, %v660_v1  ;;  %693 = vrot.lane.b32.xlu1 %v680_v4, %s1630_s7 }
 0x554   :  { %691 = vrot.lane.b32.xlu0 %v679_v5, %s1630_s7 }
 0x556   :  { %978 = vrot.lane.b32.xlu1 %v1865_v16, %s1629_s1 }
 0x558   :  { %976 = vrot.lane.b32.xlu0 %v1869_v47, %s1629_s1 }
 0x5be   :  { %v686_v33 = vpop.permute.xlu1 %685 }
 0x5bf   :  { %v698_v50 = vsel %vm197_vm1, %v1416_v3, %v686_v33 }
 0x5c0   :  { %v684_v34 = vpop.permute.xlu0 %683 }
 0x5c1   :  { %v697_v48 = vsel %vm197_vm1, %v670_v32, %v684_v34 }
 0x5c4   :  { %v694_v35 = vpop.permute.xlu1 %693 }
 0x5c5   :  { %v700_v52 = vsel %vm200_vm2, %v698_v50, %v694_v35 }
 0x5c6   :  { %v692_v49 = vpop.permute.xlu0 %691 }
 0x5c7   :  { %v699_v51 = vsel %vm200_vm2, %v697_v48, %v692_v49 }
 0x5c8   :  { %1441 = vmatprep.mubr.msk.f32.mxu0 %vm207_vm3, %v699_v51  ;;  %v979_v6 = vpop.permute.xlu1 %978 }
 0x5c9   :  { %1442 = vmatmul.mubr.msk.f32.vlgmr.msra.gmra.mxu0 %vm207_vm3, %v700_v52 }
 0x5ca   :  { %v977_v8 = vpop.permute.xlu0 %976  ;;  %1478 = vmatpush3.msra.mxu0 %v73_v12 }
 0x5cb   :  { %1479 = vmatprep.subr.mxu0 %v72_v13 }
 0x5cc   :  { %1480 = vmatpush3.msra.mxu0 %v72_v13 }
 0x5cd   :  { %1481 = vmatprep.subr.mxu0 %v71_v14 }
 0x5ce   :  { %1482 = vmatpush3.msra.mxu0 %v71_v14 }
 0x5cf   :  { %1483 = vmatprep.subr.mxu0 %v70_v15 }
 0x5d0   :  { %1484 = vmatpush3.msra.mxu0 %v70_v15 }
 0x689   :  { %v1443_v53 = vpop.f32.mrf.mxu0 }
 0x68a   :  { %v779_v54 = vadd.f32 %v1443_v53, %v1794_v37 }
 0x68b   :  { %v773_v55 = vpop.f32.mrf.mxu0 }
 0x68c   :  { %v1244_v56 = vmul.f32 -1.442695, %v779_v54  ;;  %v774_v57 = vadd.f32 %v1794_v37, %v773_v55 }
 0x68e   :  { %1517 = vpow2.f32 %v1244_v56  ;;  %v1243_v2 = vmul.f32 -1.442695, %v774_v57 }
 0x690   :  { %1519 = vpow2.f32 %v1243_v2 }
 0x69b   :  { %v1518_v18 = vpop.eup %1517 }
 0x69c   :  { %v789_v19 = vadd.f32 1.0, %v1518_v18 }
 0x69d   :  { %v1520_v20 = vpop.eup %1519 }
 0x69e   :  { %1521 = vrcp.f32 %v789_v19  ;;  %v788_v21 = vadd.f32 1.0, %v1520_v20 }
 0x6a0   :  { %1523 = vrcp.f32 %v788_v21 }
 0x6ab   :  { %v1522_v22 = vpop.eup %1521 }
 0x6ac   :  { %v795_v23 = vsub.f32 1.0, %v1522_v22  ;;  %v799_v30 = vmul.f32 %v1522_v22, %v1413_v0 }
 0x6ad   :  { %v1524_v24 = vpop.eup %1523 }
 0x6ae   :  { %v794_v25 = vsub.f32 1.0, %v1524_v24  ;;  %v797_v26 = vmul.f32 %v1416_v3, %v795_v23  ;;  %v798_v28 = vmul.f32 %v1524_v24, %v660_v1 }
 0x6b0   :  { %v796_v27 = vmul.f32 %v794_v25, %v670_v32  ;;  %v801_v38 = vadd.f32 %v799_v30, %v797_v26 }
 0x6b2   :  { %v800_v31 = vadd.f32 %v798_v28, %v796_v27 }
 0x6b4   :  { %1452 = vmatprep.mubr.msk.f32.mxu1 %vm197_vm1, %v800_v31 }
 0x6b5   :  { %1453 = vmatmul.mubr.msk.f32.vlgmr.msra.gmra.mxu1 %vm197_vm1, %v801_v38 }
 0x6b6   :  { %1456 = vmatpush3.msra.mxu1 %v1791_v36  ;;  %1463 = vmatprep.mubr.msk.f32.mxu1 %vm197_vm1, %v1869_v47 }
 0x6b7   :  { %1457 = vmatprep.subr.mxu1 %v1800_v58 }
 0x6b8   :  { %1458 = vmatpush3.msra.mxu1 %v1800_v58 }
 0x6b9   :  { %1459 = vmatprep.subr.mxu1 %v1804_v59 }
 0x6ba   :  { %1460 = vmatpush3.msra.mxu1 %v1804_v59 }
 0x6bb   :  { %1461 = vmatprep.subr.mxu1 %v1810_v60 }
 0x6bc   :  { %1462 = vmatpush3.msra.mxu1 %v1810_v60 }
 0x6bd   :  { %1464 = vmatmul.mubr.msk.f32.vlgmr.msra.gmra.mxu1 %vm197_vm1, %v1865_v16  ;;  %1466 = vmatprep.subr.mxu1 %v1818_v61 }
 0x6be   :  { %1467 = vmatpush3.msra.mxu1 %v1818_v61 }
 0x6bf   :  { %1468 = vmatprep.subr.mxu1 %v1820_v62 }
 0x6c0   :  { %1469 = vmatpush3.msra.mxu1 %v1820_v62 }
 0x6c1   :  { %1470 = vmatprep.subr.mxu1 %v1824_v63 }
 0x6c2   :  { %1471 = vmatpush3.msra.mxu1 %v1824_v63 }
 0x6c3   :  { %1472 = vmatprep.subr.mxu1 %v1830_v29 }
 0x6c4   :  { %1473 = vmatpush3.msra.mxu1 %v1830_v29 }
 0x775   :  { %v1454_v36 = vpop.f32.mrf.mxu1 }
 0x777   :  { %v874_v37 = vpop.f32.mrf.mxu1 }
 0x77d   :  { %v1465_v58 = vpop.f32.mrf.mxu1 }
 0x77e   :  { %v961_v59 = vadd.f32 %v1465_v58, %v1454_v36 }
 0x77f   :  { %v955_v60 = vpop.f32.mrf.mxu1 }
 0x780   :  { %v1250_v39 = vmul.f32 -1.442695, %v961_v59  ;;  %v956_v40 = vadd.f32 %v955_v60, %v874_v37 }
 0x782   :  { %1525 = vpow2.f32 %v1250_v39  ;;  %v1249_v61 = vmul.f32 -1.442695, %v956_v40 }
 0x784   :  { %1527 = vpow2.f32 %v1249_v61 }
 0x78f   :  { %v1526_v41 = vpop.eup %1525 }
 0x790   :  { %v971_v62 = vadd.f32 1.0, %v1526_v41 }
 0x791   :  { %v1528_v42 = vpop.eup %1527 }
 0x792   :  { %1529 = vrcp.f32 %v971_v62  ;;  %v970_v43 = vadd.f32 1.0, %v1528_v42 }
 0x794   :  { %1531 = vrcp.f32 %v970_v43 }
 0x79f   :  { %v1530_v63 = vpop.eup %1529 }
 0x7a0   :  { %v983_v7 = vmul.f32 %v1530_v63, %v979_v6  ;;  %v1080_v3 = vsub.f32 1.0, %v1530_v63 }
 0x7a1   :  { %v1532_v29 = vpop.eup %1531 }
 0x7a2   :  { %988 = vrot.lane.b32.xlu1 %v983_v7, %s1631_s8  ;;  %v982_v9 = vmul.f32 %v1532_v29, %v977_v8  ;;  %v1079_v4 = vsub.f32 1.0, %v1532_v29  ;;  %v1082_v5 = vmul.f32 %v1080_v3, %v1865_v16 }
 0x7a4   :  { %986 = vrot.lane.b32.xlu0 %v982_v9, %s1631_s8  ;;  %v1081_v35 = vmul.f32 %v1079_v4, %v1869_v47 }
 0x7a6   :  { %994 = vrot.lane.b32.xlu1 %v1454_v36, %s1630_s7 }
 0x7a8   :  { %992 = vrot.lane.b32.xlu0 %v874_v37, %s1630_s7 }
 0x814   :  { %v989_v11 = vpop.permute.xlu1 %988 }
 0x816   :  { %v987_v10 = vpop.permute.xlu0 %986 }
 0x817   :  { %1474 = vmatprep.mubr.msk.f32.mxu1 %vm197_vm1, %v987_v10 }
 0x818   :  { %1475 = vmatmul.mubr.msk.f32.vlgmr.msra.gmra.mxu1 %vm197_vm1, %v989_v11  ;;  %v995_v44 = vpop.permute.xlu1 %994 }
 0x81a   :  { %v993_v17 = vpop.permute.xlu0 %992 }
 0x8d8   :  { %v1476_v45 = vpop.f32.mrf.mxu1 }
 0x8d9   :  { %v1074_v46 = vadd.f32 %v1476_v45, %v995_v44 }
 0x8da   :  { %v1068_v0 = vpop.f32.mrf.mxu1 }
 0x8db   :  { %1533 = vtanh.f32 %v1074_v46  ;;  %v1069_v1 = vadd.f32 %v1068_v0, %v993_v17 }
 0x8dd   :  { %1535 = vtanh.f32 %v1069_v1 }
 0x8e8   :  { %v1534_v32 = vpop.eup %1533 }
 0x8e9   :  { %v1084_v33 = vmul.f32 %v1534_v32, %v1530_v63 }
 0x8ea   :  { %v1536_v34 = vpop.eup %1535 }
 0x8eb   :  { %v1083_v48 = vmul.f32 %v1536_v34, %v1532_v29  ;;  %v1086_v49 = vadd.f32 %v1084_v33, %v1082_v5 }
 0x8ed   :  { %v1085_v50 = vadd.f32 %v1083_v48, %v1081_v35  ;;  %1088 = vst.msk [vmem:[#allocation7 + $0x8] sm:$0xff] %vm197_vm1, %v1086_v49 }
 0x8ef   :  { %1485 = vmatprep.mubr.msk.f32.mxu0 %vm197_vm1, %v1085_v50  ;;  %1087 = vst.msk [vmem:[#allocation7] sm:$0xff] %vm197_vm1, %v1085_v50 }
 0x8f0   :  { %1486 = vmatmul.mubr.msk.f32.vlgmr.msra.gmra.mxu0 %vm197_vm1, %v1086_v49 }
 0x8f1   :  { %1588 = shalt.err (!%p1585_p0)
}
 0x8f2   :  { %1199 = dma.vmem_to_hbm [thread:$0]  %s1194_s10, 256, %s1952_s3, [#allocation4], %s1626_s18, %s1626_s18, %s1627_s19   ;;  %vm1184_vm4 = vcmask 1040384   ;;  %vm1186_vm5 = vcmask 254976  }
 0x8f3   :  { %s1633_s14 = smov [#allocation8]  }
 0x8f4   :  { %s1206_s15 = sshll.u32 %s1633_s14, 4  ;;  %s1207_s15 = int_to_ptr.vmem [resolvable:$true] %s1206_s15 }
 0x8f5   :  { %s1597_s3 = scalar_lea.vmem %s1207_s15, 32  ;;  %p1602_p2 = scmp.lt.s32.totalorder %s1207_s15, %s1207_s15 }
 0x8f6   :  { %p1598_p1 = scmp.ne.s32.totalorder %s1207_s15, %s1597_s3  ;;  %p1603_p3 = scmp.lt.s32.totalorder %s1597_s3, %s1597_s3 }
 0x8f8   :  { %p1604_p4 = por %p1603_p3, %p1602_p2 }
 0x8fa   :  { %p1605_p5 = pnand %p1604_p4, %p1598_p1 }
 0x9b0   :  { %v1487_v16 = vpop.f32.mrf.mxu0 }
 0x9b1   :  { %v1177_v47 = vsel %vm197_vm1, %v1487_v16, -inf }
 0x9b2   :  { %v1178_v51 = vrot.slane %v1177_v47, 4  ;;  %v1161_v52 = vpop.f32.mrf.mxu0 }
 0x9b3   :  { %v1170_v53 = vsel %vm197_vm1, %v1161_v52, -inf }
 0x9b4   :  { %v1179_v54 = vmax.f32 %v1177_v47, %v1178_v51  ;;  %v1171_v55 = vrot.slane %v1170_v53, 4 }
 0x9b6   :  { %v1180_v56 = vrot.slane %v1179_v54, 2  ;;  %v1172_v57 = vmax.f32 %v1170_v53, %v1171_v55 }
 0x9b8   :  { %v1181_v2 = vmax.f32 %v1179_v54, %v1180_v56  ;;  %v1173_v18 = vrot.slane %v1172_v57, 2 }
 0x9ba   :  { %v1182_v19 = vrot.slane %v1181_v2, 1  ;;  %v1174_v20 = vmax.f32 %v1172_v57, %v1173_v18 }
 0x9bc   :  { %v1175_v21 = vrot.slane %v1174_v20, 1  ;;  %v1183_v22 = vmax.f32 %v1181_v2, %v1182_v19 }
 0x9be   :  { %v1176_v23 = vmax.f32 %v1174_v20, %v1175_v21 }
 0x9c0   :  { %v1185_v24 = vsel %vm1184_vm4, %v1176_v23, %v1183_v22 }
 0x9c1   :  { %1187 = vst.msk [vmem:[#allocation8] sm:$0x3] %vm1186_vm5, %v1185_v24 }
 0x9c2   :  { %1608 = shalt.err (!%p1605_p5)
}
 0x9c3   :  { %1209 = dma.vmem_to_hbm [thread:$0]  %s1207_s15, 32, %s1953_s4, [#allocation9]  }
 0x9c4   :  { %1621 = dma.done.wait [#allocation4], 256  }
 0x9c5   :  { %1622 = vsyncadd [#allocation4], 4294967040 }
 0x9c6   :  { %1623 = dma.done.wait [#allocation9], 32  }
 0x9c7   :  { %1624 = vsyncadd [#allocation9], 4294967264 }
 0x9c8   :  { %1216 = vsyncpa [#allocation3], 1 }
 0x9c9   :  { %1217 = vsyncpa [#allocation6], 1 }
 0x9ca   :  { %1218 = vsyncpa [#allocation4], 1 }
 0x9cb   :  { %1219 = vsyncpa [#allocation9], 1 }

</bundles_post_ra>
